<compile_context>
chip_gen: v7x
topology: tpu7x:2x2x1
jax: 0.10.0
libtpu: 0.0.40
codegen_flags: <defaults>
</compile_context>

<pallas_src>
import functools

import jax
import jax.numpy as jnp
from jax import lax
from jax.experimental import pallas as pl
from jax.experimental.pallas import tpu as pltpu

_NEG_BIG = -1e30  # large negative (NOT -inf, avoids inf-inf -> NaN) for padded vocab lanes


def _conv_decoder_kernel(x_ref, w_ref, b_ref, o_ref, *, v_out, compute_dtype):
    """x_ref: (C, TT) input dtype   w_ref: (C, Vpad) bf16   b_ref: (1, Vpad) f32
    o_ref: (TT, V) out dtype."""
    # In-VMEM cast (free under the memory-bound slack; no-op if x is already bf16).
    x = x_ref[...].astype(compute_dtype)

    # Pointwise Conv1d(kernel_size=1): contract the C axis.  Contracting the
    # leading LHS axis lets the MXU consume the NCT tile directly (no wrapper
    # transpose pass).  Accumulate in f32.
    logits = lax.dot_general(
        x, w_ref[...],
        dimension_numbers=(((0,), (0,)), ((), ())),
        preferred_element_type=jnp.float32,
    ) + b_ref[...]                                              # (TT, Vpad) f32

    # Numerically-stable log-softmax over the lane-dense padded vocab axis.
    # Padded lanes carry a -1e30 bias -> exp underflows to exactly 0.  Keep all
    # of this in f32 (v5e VPU/EUP have no bf16 path; -1e30 would flush in bf16).
    m = jnp.max(logits, axis=-1, keepdims=True)
    shifted = logits - m
    lse = jnp.log(jnp.sum(jnp.exp(shifted), axis=-1, keepdims=True))
    res = shifted - lse                                         # (TT, Vpad) f32

    # Store only the V real vocab lanes (masked vst); padded lanes never hit HBM.
    o_ref[...] = res[:, :v_out].astype(o_ref.dtype)


def prepare_conv_decoder_params(conv_weight, conv_bias, *, compute_dtype=jnp.bfloat16):
    """One-time parameter plumbing (hoist out of the per-step forward path).

    conv_weight: (V, C, 1)  nn.Conv1d weight
    conv_bias:   (V,)       nn.Conv1d bias
    returns: (w_padded (C, Vpad) compute_dtype, b_padded (1, Vpad) f32, V)
    """
    V, C, K = conv_weight.shape
    assert K == 1, "ConvDecoder uses kernel_size=1"
    Vpad = 128 * pl.cdiv(V, 128)                                # lane-dense matmul width
    w = jnp.transpose(conv_weight[:, :, 0], (1, 0)).astype(compute_dtype)   # (C, V)
    w = jnp.pad(w, ((0, 0), (0, Vpad - V)))
    b = jnp.pad(conv_bias.astype(jnp.float32), (0, Vpad - V),
                constant_values=_NEG_BIG).reshape(1, Vpad)
    return w, b, V


def _derive_time_tile(T, C, Vpad, x_itemsize, out_itemsize, budget_bytes, B):
    """Largest 128-aligned time tile whose double-buffered working set fits the
    VMEM budget, shrunk if needed so v7x's two TensorCores get enough grid steps."""
    resident = 2 * (C * Vpad * 2 + Vpad * 4)                    # weights + bias
    per_row = (2 * C * x_itemsize                               # double-buffered x tile
               + 2 * Vpad * out_itemsize                        # double-buffered out tile (lane-rounded)
               + Vpad * 4)                                      # in-flight f32 logits
    tt = max(128, int((budget_bytes - resident) // per_row))
    if T <= tt:
        return T
    tt = max(128, (tt // 128) * 128)
    # v7x has 2 TCs/chip; make sure B * nt gives both cores several parallel steps.
    min_steps = 8
    if B * ((T + tt - 1) // tt) < min_steps:
        need_nt = (min_steps + B - 1) // B
        tt_bal = ((T + need_nt - 1) // need_nt + 127) // 128 * 128
        tt = max(128, min(tt, tt_bal))
    return tt


def conv_decoder_forward(x, w_padded, b_padded, v_out, *,
                         out_dtype=jnp.float32,
                         compute_dtype=jnp.bfloat16,
                         vmem_budget_bytes=12 << 20):
    """
    x:        (B, C, T)    -- same NCT layout as the PyTorch module input (any float dtype)
    w_padded: (C, Vpad)    -- from prepare_conv_decoder_params
    b_padded: (1, Vpad)    -- from prepare_conv_decoder_params
    v_out:    int          -- real vocab size V (= len(labels) + 1)
    returns:  (B, T, V) log-probabilities in out_dtype (f32 default; bf16 opt-in halves
              the dominant output HBM stream -- validate CTC-loss accuracy first).
    """
    B, C, T = x.shape
    Cw, Vpad = w_padded.shape
    assert Cw == C, f"weight feat_in {Cw} != input channels {C}"

    x_itemsize = x.dtype.itemsize
    out_itemsize = jnp.dtype(out_dtype).itemsize

    tt = _derive_time_tile(T, C, Vpad, x_itemsize, out_itemsize, vmem_budget_bytes, B)
    nt = pl.cdiv(T, tt)

    # Explicit scoped-VMEM limit sized to the actual working set (+50% headroom),
    # clamped to [16 MiB default-safe, 64 MiB v7x physical].
    vmem_est = (2 * tt * C * x_itemsize
                + 2 * tt * Vpad * out_itemsize
                + tt * Vpad * 4
                + 2 * (C * Vpad * w_padded.dtype.itemsize + Vpad * 4))
    vmem_limit = min(64 << 20, max(16 << 20, int(vmem_est * 1.5)))

    kernel = functools.partial(_conv_decoder_kernel,
                               v_out=v_out, compute_dtype=compute_dtype)

    out = pl.pallas_call(
        kernel,
        out_shape=jax.ShapeDtypeStruct((B, T, v_out), out_dtype),
        grid=(B, nt),
        in_specs=[
            # x in native NCT layout, tiled over (batch, time); batch dim squeezed.
            pl.BlockSpec((None, C, tt), lambda bi, ti: (bi, 0, ti)),
            # Weights / bias stay resident across the whole grid.
            pl.BlockSpec((C, Vpad), lambda bi, ti: (0, 0)),
            pl.BlockSpec((1, Vpad), lambda bi, ti: (0, 0)),
        ],
        # Output last dim is exactly V (full-dim block): no padded-lane writes, no
        # wrapper slice.  TODO(synk): sweep pipeline_mode=pl.Buffered(3) here if a
        # trace shows exposed output-writeback DMA.
        out_specs=pl.BlockSpec((None, tt, v_out), lambda bi, ti: (bi, ti, 0)),
        compiler_params=pltpu.CompilerParams(
            dimension_semantics=("parallel", "parallel"),
            vmem_limit_bytes=vmem_limit),
        cost_estimate=pl.CostEstimate(
            flops=2 * B * T * C * Vpad,
            transcendentals=B * T * (Vpad + 1),
            bytes_accessed=(B * C * T * x_itemsize
                            + C * Vpad * w_padded.dtype.itemsize
                            + B * T * v_out * out_itemsize)),
    )(x, w_padded, b_padded)

    return out


def conv_decoder_apply(x, conv_weight, conv_bias, **kwargs):
    """Convenience wrapper: prepare params then run the fused forward.
    For inference loops, call prepare_conv_decoder_params once at init instead."""
    compute_dtype = kwargs.pop("compute_dtype", jnp.bfloat16)
    w, b, V = prepare_conv_decoder_params(conv_weight, conv_bias, compute_dtype=compute_dtype)
    return conv_decoder_forward(x, w, b, V, compute_dtype=compute_dtype, **kwargs)


def _reference_forward(x, conv_weight, conv_bias):
    """Pure-JAX f32 reference mirroring the PyTorch forward."""
    logits = jnp.einsum("vc,bct->bvt", conv_weight[:, :, 0], x) + conv_bias[None, :, None]
    return jax.nn.log_softmax(jnp.transpose(logits, (0, 2, 1)), axis=-1)    # B x T x V


if __name__ == "__main__":
    # Module hyperparameters consistent with ConvDecoder.__init__:
    feat_in = 32
    labels = list("abcdefghi")         # 9 labels
    V = len(labels) + 1                # +1 CTC blank -> 10 output channels

    B, C, T = 2, feat_in, 16

    key = jax.random.PRNGKey(0)
    kx, kw, kb = jax.random.split(key, 3)

    x = jax.random.normal(kx, (B, C, T), dtype=jnp.float32)
    conv_weight = jax.random.normal(kw, (V, C, 1), dtype=jnp.float32) * 0.1
    conv_bias = jax.random.normal(kb, (V,), dtype=jnp.float32) * 0.1

    # Parameter prep hoisted out of the forward path (done once).
    w_padded, b_padded, v_out = prepare_conv_decoder_params(conv_weight, conv_bias)

    logprobs = conv_decoder_forward(x, w_padded, b_padded, v_out)
    jax.block_until_ready(logprobs)

    ref = _reference_forward(x, conv_weight, conv_bias)
    assert logprobs.shape == (B, T, V)

    # bf16 MXU operands -> compare against the f32 reference with a matching tolerance.
    err = float(jnp.max(jnp.abs(logprobs - ref)))
    assert err < 3e-2, f"mismatch vs reference: max abs err {err}"

    # log-softmax rows must (approximately) normalize.
    row_sum = jnp.sum(jnp.exp(logprobs), axis=-1)
    assert jnp.allclose(row_sum, 1.0, atol=2e-2), "log-softmax rows not normalized"

    # TODO(synk): decode()/unique_consecutive()/ids_to_tokens() are host-side string
    # post-processing with no tensor compute; not implemented as a kernel.
    print("KERNEL_OK")
</pallas_src>

<mosaic_0001>
module attributes {stable_mosaic.version = 11 : i64} {
  func.func @_conv_decoder_kernel(%arg0: i32, %arg1: i32, %arg2: memref<1x32x16xf32, #tpu.memory_space<vmem>>, %arg3: memref<32x128xbf16, #tpu.memory_space<vmem>>, %arg4: memref<1x128xf32, #tpu.memory_space<vmem>>, %arg5: memref<1x16x10xf32, #tpu.memory_space<vmem>>) attributes {dimension_semantics = [#tpu.dimension_semantics<parallel>, #tpu.dimension_semantics<parallel>], iteration_bounds = array<i64: 2, 1>, scalar_prefetch = 0 : i64, scratch_operands = 0 : i64, tpu.core_type = #tpu.core_type<tc>, window_params = [{transform_indices = @transform_0, window_bounds = array<i64: 1, 32, 16>}, {pipeline_mode = #tpu.pipeline_mode<synchronous>, transform_indices = @transform_1, window_bounds = array<i64: 32, 128>}, {pipeline_mode = #tpu.pipeline_mode<synchronous>, transform_indices = @transform_2, window_bounds = array<i64: 1, 128>}, {transform_indices = @transform_3, window_bounds = array<i64: 1, 16, 10>}]} {
    %c0 = arith.constant 0 : index
    %c0_0 = arith.constant 0 : index
    %c0_1 = arith.constant 0 : index
    %0 = vector.load %arg2[%c0, %c0_0, %c0_1] : memref<1x32x16xf32, #tpu.memory_space<vmem>>, vector<1x32x16xf32>
    %1 = vector.shape_cast %0 : vector<1x32x16xf32> to vector<32x16xf32>
    %2 = arith.truncf %1 : vector<32x16xf32> to vector<32x16xbf16>
    %c0_2 = arith.constant 0 : index
    %c0_3 = arith.constant 0 : index
    %3 = vector.load %arg3[%c0_2, %c0_3] : memref<32x128xbf16, #tpu.memory_space<vmem>>, vector<32x128xbf16>
    %cst = arith.constant dense<0.000000e+00> : vector<16x128xf32>
    %4 = tpu.matmul %2, %3, %cst {dimension_numbers = #tpu.dot_dimension_numbers<[0], [0], [1], [1], [0, 1, 1, 1], [], []>} : vector<32x16xbf16>, vector<32x128xbf16>, vector<16x128xf32> -> vector<16x128xf32>
    %c0_4 = arith.constant 0 : index
    %c0_5 = arith.constant 0 : index
    %5 = vector.load %arg4[%c0_4, %c0_5] : memref<1x128xf32, #tpu.memory_space<vmem>>, vector<1x128xf32>
    %6 = vector.broadcast %5 : vector<1x128xf32> to vector<16x128xf32>
    %7 = arith.addf %4, %6 : vector<16x128xf32>
    %cst_6 = arith.constant dense<0xFF800000> : vector<16xf32>
    %8 = vector.multi_reduction <maximumf>, %7, %cst_6 [1] : vector<16x128xf32> to vector<16xf32>
    %9 = vector.shape_cast %8 : vector<16xf32> to vector<16x1xf32>
    %10 = vector.broadcast %9 : vector<16x1xf32> to vector<16x128xf32>
    %11 = arith.subf %7, %10 : vector<16x128xf32>
    %12 = math.exp %11 : vector<16x128xf32>
    %cst_7 = arith.constant dense<0.000000e+00> : vector<16xf32>
    %13 = vector.multi_reduction <add>, %12, %cst_7 [1] : vector<16x128xf32> to vector<16xf32>
    %14 = vector.shape_cast %13 : vector<16xf32> to vector<16x1xf32>
    %15 = math.log %14 : vector<16x1xf32>
    %16 = vector.broadcast %15 : vector<16x1xf32> to vector<16x128xf32>
    %17 = arith.subf %11, %16 : vector<16x128xf32>
    %18 = vector.extract_strided_slice %17 {offsets = [0, 0], sizes = [16, 10], strides = [1, 1]} : vector<16x128xf32> to vector<16x10xf32>
    %c0_8 = arith.constant 0 : index
    %c0_9 = arith.constant 0 : index
    %c0_10 = arith.constant 0 : index
    %19 = vector.load %arg5[%c0_8, %c0_9, %c0_10] : memref<1x16x10xf32, #tpu.memory_space<vmem>>, vector<1x16x10xf32>
    %20 = vector.shape_cast %19 : vector<1x16x10xf32> to vector<16x10xf32>
    %21 = vector.shape_cast %18 : vector<16x10xf32> to vector<1x16x10xf32>
    tpu.vector_store %arg5[%c0_8, %c0_9, %c0_10], %21 {strides = array<i32>} : memref<1x16x10xf32, #tpu.memory_space<vmem>>, vector<1x16x10xf32>,
    return
  }
  func.func @transform_0(%arg0: i32, %arg1: i32) -> (i32, i32, i32) {
    %c0_i32 = arith.constant 0 : i32
    %c0_i32_0 = arith.constant 0 : i32
    return %arg0, %c0_i32, %arg1 : i32, i32, i32
  }
  func.func @transform_1(%arg0: i32, %arg1: i32) -> (i32, i32) {
    %c0_i32 = arith.constant 0 : i32
    %c0_i32_0 = arith.constant 0 : i32
    %c0_i32_1 = arith.constant 0 : i32
    return %c0_i32, %c0_i32_0 : i32, i32
  }
  func.func @transform_2(%arg0: i32, %arg1: i32) -> (i32, i32) {
    %c0_i32 = arith.constant 0 : i32
    %c0_i32_0 = arith.constant 0 : i32
    %c0_i32_1 = arith.constant 0 : i32
    return %c0_i32, %c0_i32_0 : i32, i32
  }
  func.func @transform_3(%arg0: i32, %arg1: i32) -> (i32, i32, i32) {
    %c0_i32 = arith.constant 0 : i32
    %c0_i32_0 = arith.constant 0 : i32
    return %arg0, %arg1, %c0_i32 : i32, i32, i32
  }
}

</mosaic_0001>

<bundles_post_ra>
// kernel: tpu_custom_call.1
= control target key start
LH: loop header
LB: loop body
LE: loop exit
PB: predicated region body
PF: predicated region fallthrough
CT: control target
= control target key end

     0   :  { %s517_s12 = smov 0   ;;  %s519_s13 = smov 0   ;;  %s563_s0 = inlined_call_operand.vmem [shape: f32[2,32,16], index: 0, kind: input, shape index: {}]   ;;  %s564_s1 = inlined_call_operand.vmem [shape: bf16[32,128], index: 1, kind: input, shape index: {}]   ;;  %s565_s2 = inlined_call_operand.vmem [shape: f32[1,128], index: 2, kind: input, shape index: {}]   ;;  %s566_s3 = inlined_call_operand.vmem [shape: f32[2,16,10], index: 3, kind: output, shape index: {}]  }
   0x1   :  { %s521_s14 = smov 0  }
   0x2 LB: > { %s25_s15 = sadd.s32 1, %s489_s13  ;;  %p410_p0 = scmp.ge.s32.totalorder %s493_s14, 1  ;;  %s493_s14 = sphi %s521_s14, %s13_s14   ;;  %s489_s13 = sphi %s519_s13, %s568_s13   ;;  %s485_s12 = sphi %s517_s12, %s567_s12  }
   0x3   : > { %p27_p1 = scmp.ge.s32.totalorder %s25_s15, 2  ;;  %p156_p2 = scmp.lt.s32.totalorder %s493_s14, 3 }
   0x5   : > { %s570_s15 = smov (%p27_p1, %s25_s15), 0  ;;  %p157_p3 = pnand %p410_p0, %p156_p2 }
   0x6   : > { %p187_p4 = scmp.lt.s32.totalorder (!%p157_p3), %s485_s12, 1  ;;  %v461_v0 = vld [vmem:[%s564_s1] sm:$0xff] (!%p157_p3)   ;;  %v495_v1 = vmov (!%p157_p3), 0.0   ;;  %v462_v2 = vld [vmem:[%s564_s1 + $0x8] sm:$0xff] (!%p157_p3)   ;;  %vm496_vm0 = vmmov (!%p157_p3), 0   ;;  %vm251_vm1 = vcmask (!%p157_p3), 261120  }
   0x7   : > { %160 = sbr.rel (%p157_p3) target bundleno = 656 (0x290), region = 32  ;;  %426 = vmatprep.subr.bf16.mxu0 (!%p157_p3), %v495_v1  ;;  %430 = vmatprep.mubr.msk.bf16.mxu0 (!%p157_p3), %vm496_vm0, %v495_v1  ;;  %v415_v10 = vld [vmem:[%s565_s2] ss:$0 sm:$0xff] (!%p157_p3)  ;;  %vm316_vm2 = vcmask (!%p157_p3), 80896  }
   0x8   : > { %427 = vmatpush3.bf16.msra.mxu0 (!%p157_p3), %v461_v0 }
   0x9   : > { %428 = vmatprep.subr.bf16.mxu0 (!%p157_p3), %v495_v1 }
   0xc   : > { %429 = vmatpush3.bf16.msra.mxu0 (!%p157_p3), %v462_v2 }
   0xe   : > { %s572_s12 = smov (!%p187_p4, %s485_s12), 1 }
   0xf   : > { %s421_s20 = sshll.u32 %s572_s12, 5  ;;  %s422_s26 = sshll.u32 %s572_s12, 4 }
  0x10   : > { %s194_s23 = scalar_lea.vmem %s563_s0, %s421_s20  ;;  %s203_s29 = scalar_lea.vmem %s566_s3, %s422_s26 }
  0x11   : > { %v206_v3 = vld [vmem:[%s194_s23] sm:$0xff]  ;;  %v207_v4 = vld [vmem:[%s194_s23 + $0x8] sm:$0xff]  ;;  %v208_v5 = vld [vmem:[%s194_s23 + $0x10] sm:$0xff] }
  0x12   : > { %v210_v6 = vpack.c.bf16 %v207_v4, %v206_v3  ;;  %v209_v7 = vld [vmem:[%s194_s23 + $0x18] sm:$0xff] }
  0x13   : > { %v211_v8 = vpack.c.bf16 %v209_v7, %v208_v5 }
  0x14   : > { %223 = vxpose.xlu0.c.b16.start [1/2] (short) (narrow) %v210_v6, 16 }
  0x18   : > { %224 = vxpose.xlu0.c.b16.end [2/2] (short) (narrow) %v211_v8, 16 }
  0x7a   : > { %v231_v9 = vpop.trf.xlu0 }
  0x7b   : > { %431 = vmatmul.mubr.msk.bf16.vlgmr.msra.gmra.mrb[0].mxu0 %vm251_vm1, %v231_v9 }
 0x14e   : > { %v289_v11 = vpop.f32.mrb[0].mxu0 }
 0x14f   : > { %v290_v12 = vadd.f32 %v415_v10, %v289_v11  ;;  %v432_v13 = vpop.f32.mrb[1].mxu0 }
 0x150   : > { %v292_v14 = vpop.f32.mrb[2].mxu0 }
 0x151   : > { %296 = vmax.xlane.f32.xlu1 %v290_v12  ;;  %v433_v15 = vpop.f32.mrb[3].mxu0  ;;  %v293_v16 = vadd.f32 %v415_v10, %v292_v14 }
 0x155   : > { %298 = vmax.xlane.f32.xlu1 %v293_v16 }
 0x1de   : > { %v297_v17 = vpop.xlane.xlu1 %296 }
 0x1df   : > { %v300_v18 = vsub.f32 %v290_v12, %v297_v17 }
 0x1e1   : > { %v302_v19 = vmul.f32 1.442695, %v300_v18 }
 0x1e2   : > { %v299_v20 = vpop.xlane.xlu1 %298 }
 0x1e3   : > { %463 = vpow2.f32 %v302_v19  ;;  %v301_v21 = vsub.f32 %v293_v16, %v299_v20 }
 0x1e5   : > { %v304_v22 = vmul.f32 1.442695, %v301_v21 }
 0x1e7   : > { %465 = vpow2.f32 %v304_v22 }
 0x1ed   : > { %v464_v23 = vpop.eup %463 }
 0x1ee   : > { %306 = vadd.xlane.f32.xlu0 %v464_v23 }
 0x1f1   : > { %v466_v24 = vpop.eup %465 }
 0x1f2   : > { %308 = vadd.xlane.f32.xlu1 %v466_v24 }
 0x27b   : > { %v307_v25 = vpop.xlane.xlu0 %306 }
 0x27c   : > { %467 = vlog2.f32 %v307_v25 }
 0x27f   : > { %v309_v26 = vpop.xlane.xlu1 %308 }
 0x280   : > { %469 = vlog2.f32 %v309_v26 }
 0x286   : > { %v468_v27 = vpop.eup %467 }
 0x287   : > { %v311_v28 = vmul.f32 0.6931472, %v468_v27 }
 0x289   : > { %v314_v29 = vsub.f32 %v300_v18, %v311_v28 }
 0x28a   : > { %v470_v30 = vpop.eup %469 }
 0x28b   : > { %317 = vst.msk [vmem:[%s203_s29] sm:$0xff] %vm316_vm2, %v314_v29  ;;  %v313_v31 = vmul.f32 0.6931472, %v470_v30 }
 0x28d   : > { %v315_v32 = vsub.f32 %v301_v21, %v313_v31 }
 0x28f   : > { %318 = vst.msk [vmem:[%s203_s29 + $0x8] sm:$0xff] %vm316_vm2, %v315_v32 }
 0x290 PF: > { %s13_s14 = sadd.s32 1, %s493_s14   ;;  %s567_s12 = smov %s489_s13 }
 0x291   : > { %p10_p5 = scmp.ge.s32.totalorder %s13_s14, 4   ;;  %s568_s13 = smov %s570_s15 }
 0x293   :  { %12 = sbr.rel (!%p10_p5) target bundleno = 2 (0x2), region = 62 }

</bundles_post_ra>
